<compile_context>
chip_gen: v5e
topology: v5e:2x2
jax: 0.10.0
libtpu: 0.0.40
codegen_flags: <defaults>
</compile_context>

<pallas_src>
import functools

import jax
import jax.numpy as jnp
import numpy as np
from jax.experimental import pallas as pl
from jax.experimental.pallas import tpu as pltpu


# --------------- Kernel 1: fused depthwise conv3 (K & V) + ReLU + BN partial stats ---------------
def _dwconv_relu_stats_kernel(xt_ref, wk_ref, wv_ref, yk_ref, yv_ref, stats_ref):
    # xt_ref: (1, L, C) channels-last input; wk_ref / wv_ref: (3, C) taps-on-sublanes.
    x = xt_ref[0]                                     # (L, C) f32
    C = x.shape[1]
    zero_row = jnp.zeros((1, C), x.dtype)
    x_prev = jnp.concatenate([zero_row, x[:-1, :]], axis=0)   # x[l-1], row 0 is the zero pad
    x_next = jnp.concatenate([x[1:, :], zero_row], axis=0)    # x[l+1], last row is the zero pad

    wk = wk_ref[...]
    wv = wv_ref[...]
    yk = jnp.maximum(wk[0:1] * x_prev + wk[1:2] * x + wk[2:3] * x_next, 0.0)   # (L, C) f32
    yv = jnp.maximum(wv[0:1] * x_prev + wv[1:2] * x + wv[2:3] * x_next, 0.0)

    yk_ref[0] = yk.astype(yk_ref.dtype)               # bf16 store (MXU input downstream)
    yv_ref[0] = yv.astype(yv_ref.dtype)

    # Per-batch per-channel partials for train-mode BN: [sum_k, sumsq_k, sum_v, sumsq_v].
    stats_ref[0] = jnp.concatenate(
        [jnp.sum(yk, axis=0, keepdims=True),
         jnp.sum(yk * yk, axis=0, keepdims=True),
         jnp.sum(yv, axis=0, keepdims=True),
         jnp.sum(yv * yv, axis=0, keepdims=True)], axis=0)


# --------------- Kernel 2: QKV projections + per-head attention + fused output projection ---------
def _smhsa_attn_kernel(xq_ref, xk_ref, xv_ref,
                       wq_ref, wk_ref, wv_ref, bk_ref, bv_ref, wo_ref, bo_ref,
                       o_ref, *, heads, d_k, d_v):
    bf16 = jnp.bfloat16
    f32 = jnp.float32

    xq = xq_ref[0].astype(bf16)                       # (L, C)
    xk = xk_ref[0]                                    # already bf16
    xv = xv_ref[0]

    # Projections (BN already folded into wk/wv + bk/bv in the wrapper).
    q = jnp.dot(xq, wq_ref[...], preferred_element_type=f32)                 # (L, H*dk)
    k = jnp.dot(xk, wk_ref[...], preferred_element_type=f32) + bk_ref[...]   # (L, H*dk)
    v = jnp.dot(xv, wv_ref[...], preferred_element_type=f32) + bv_ref[...]   # (L, H*dv)

    scale = d_k ** -0.5
    head_outs = []
    for h in range(heads):                            # static unrolled head loop (small H)
        qh = q[:, h * d_k:(h + 1) * d_k].astype(bf16)
        kh = k[:, h * d_k:(h + 1) * d_k].astype(bf16)
        vh = v[:, h * d_v:(h + 1) * d_v].astype(bf16)
        # s = qh @ kh^T in f32 (no explicit transpose: contract last dims of both).
        s = jax.lax.dot_general(qh, kh, (((1,), (1,)), ((), ())),
                                preferred_element_type=f32) * scale          # (L, L)
        s = s - jnp.max(s, axis=-1, keepdims=True)
        p = jnp.exp(s)                                                        # f32 softmax math
        p = p * pl.reciprocal(jnp.sum(p, axis=-1, keepdims=True), approx=True)
        head_outs.append(jnp.dot(p.astype(bf16), vh, preferred_element_type=f32))   # (L, dv)

    # Single fused output projection: concat heads -> one (L, H*dv) @ (H*dv, C) matmul.
    o_all = jnp.concatenate(head_outs, axis=-1).astype(bf16)                  # (L, H*dv)
    out = jnp.dot(o_all, wo_ref[...], preferred_element_type=f32) + bo_ref[...]
    o_ref[0] = out.astype(o_ref.dtype)


# ------------------------------------------- wrapper -------------------------------------------
def smhsa_forward(x, params, *, heads, d_k, d_v, stride=1):
    assert stride == 1, "only stride=1 implemented"   # TODO(synk): strided depthwise conv
    assert d_k == d_v, "fc_o is Linear(heads*d_k, C): requires d_k == d_v"
    B, C, L = x.shape
    hk, hv = heads * d_k, heads * d_v

    # The single layout change done in XLA: (B, C, L) -> (B, L, C), shared by both kernels.
    xt = jnp.transpose(x, (0, 2, 1)).astype(jnp.float32)

    per_batch = lambda b: (b, 0, 0)
    full2d = lambda b: (0, 0)
    parallel = pltpu.CompilerParams(dimension_semantics=("parallel",))

    # --- kernel 1: fused K/V depthwise conv + ReLU + BN partial stats ---
    yk, yv, stats = pl.pallas_call(
        _dwconv_relu_stats_kernel,
        out_shape=(
            jax.ShapeDtypeStruct((B, L, C), jnp.bfloat16),
            jax.ShapeDtypeStruct((B, L, C), jnp.bfloat16),
            jax.ShapeDtypeStruct((B, 4, C), jnp.float32),
        ),
        grid=(B,),
        in_specs=[
            pl.BlockSpec((1, L, C), per_batch),       # x channels-last
            pl.BlockSpec((3, C), full2d),             # conv_k taps
            pl.BlockSpec((3, C), full2d),             # conv_v taps
        ],
        out_specs=[
            pl.BlockSpec((1, L, C), per_batch),
            pl.BlockSpec((1, L, C), per_batch),
            pl.BlockSpec((1, 4, C), per_batch),
        ],
        compiler_params=parallel,
    )(xt, params["conv_k_w"].T, params["conv_v_w"].T)

    # --- tiny cross-batch BN reduction + fold of the BN affine into the K/V projections ---
    n = float(B * L)
    eps = 1e-5
    sums = jnp.sum(stats, axis=0)                               # (4, C)
    mean_k = sums[0] / n
    var_k = jnp.maximum(sums[1] / n - mean_k * mean_k, 0.0)     # biased var (PyTorch train BN)
    ks = jax.lax.rsqrt(var_k + eps)                             # gamma = 1
    kb = -mean_k * ks                                           # beta = 0
    mean_v = sums[2] / n
    var_v = jnp.maximum(sums[3] / n - mean_v * mean_v, 0.0)
    vs = jax.lax.rsqrt(var_v + eps)
    vb = -mean_v * vs

    wq_b = params["wq"].astype(jnp.bfloat16)
    wk_f = (ks[:, None] * params["wk"]).astype(jnp.bfloat16)    # BN scale folded into Wk
    wv_f = (vs[:, None] * params["wv"]).astype(jnp.bfloat16)
    bk = (kb @ params["wk"]).reshape(1, hk).astype(jnp.float32)  # BN shift folded into a bias
    bv = (vb @ params["wv"]).reshape(1, hv).astype(jnp.float32)
    wo_b = params["wo"].astype(jnp.bfloat16)
    bo = params["bo"].astype(jnp.float32)

    # --- kernel 2: attention ---
    # TODO(synk): for large L, add a KV-tile grid axis with online softmax (flash-style) and an
    # explicit vmem_limit_bytes so the per-head (L, L) score matrices fit v7x's 64 MiB VMEM.
    out = pl.pallas_call(
        functools.partial(_smhsa_attn_kernel, heads=heads, d_k=d_k, d_v=d_v),
        out_shape=jax.ShapeDtypeStruct((B, L, C), jnp.float32),
        grid=(B,),
        in_specs=[
            pl.BlockSpec((1, L, C), per_batch),   # xq (raw x, channels-last)
            pl.BlockSpec((1, L, C), per_batch),   # yk (bf16, BN folded into weights)
            pl.BlockSpec((1, L, C), per_batch),   # yv
            pl.BlockSpec((C, hk), full2d),        # Wq (bf16)
            pl.BlockSpec((C, hk), full2d),        # Wk' (bf16, BN-scaled)
            pl.BlockSpec((C, hv), full2d),        # Wv'
            pl.BlockSpec((1, hk), full2d),        # folded K bias (f32)
            pl.BlockSpec((1, hv), full2d),        # folded V bias
            pl.BlockSpec((hv, C), full2d),        # Wo (bf16)
            pl.BlockSpec((1, C), full2d),         # bo
        ],
        out_specs=pl.BlockSpec((1, L, C), per_batch),
        compiler_params=parallel,
    )(xt, yk, yv, wq_b, wk_f, wv_f, bk, bv, wo_b, bo)

    # PyTorch: result.view(b, channels, -1) on the contiguous (B, L, C) tensor = raw reshape.
    return jnp.reshape(out, (B, C, L))


# ----------------------------- deterministic parameter init -----------------------------
def init_params(key, channels, heads, d_k, d_v):
    ks = jax.random.split(key, 6)

    def lin(k, fan_in, fan_out):
        bound = 1.0 / np.sqrt(fan_in)
        return jax.random.uniform(k, (fan_in, fan_out), jnp.float32, -bound, bound)

    return dict(
        conv_k_w=jax.random.normal(ks[0], (channels, 3), jnp.float32) * 0.1,
        conv_v_w=jax.random.normal(ks[1], (channels, 3), jnp.float32) * 0.1,
        wq=lin(ks[2], channels, heads * d_k),
        wk=lin(ks[3], channels, heads * d_k),
        wv=lin(ks[4], channels, heads * d_v),
        wo=lin(ks[5], heads * d_v, channels),
        bo=jnp.zeros((1, channels), jnp.float32),
    )


# ----------------------------- pure-JAX f32 reference for validation -----------------------------
def smhsa_reference(x, params, *, heads, d_k, d_v):
    B, C, L = x.shape

    def dwconv_bn(w):
        xp = jnp.pad(x, ((0, 0), (0, 0), (1, 1)))
        y = (w[None, :, 0:1] * xp[:, :, 0:L]
             + w[None, :, 1:2] * xp[:, :, 1:L + 1]
             + w[None, :, 2:3] * xp[:, :, 2:L + 2])
        y = jnp.maximum(y, 0.0)
        mean = jnp.mean(y, axis=(0, 2), keepdims=True)
        var = jnp.mean(jnp.square(y - mean), axis=(0, 2), keepdims=True)
        return (y - mean) / jnp.sqrt(var + 1e-5)

    xq = jnp.transpose(x, (0, 2, 1))
    xk = jnp.transpose(dwconv_bn(params["conv_k_w"]), (0, 2, 1))
    xv = jnp.transpose(dwconv_bn(params["conv_v_w"]), (0, 2, 1))
    q = (xq @ params["wq"]).reshape(B, L, heads, d_k).transpose(0, 2, 1, 3)
    k = (xk @ params["wk"]).reshape(B, L, heads, d_k).transpose(0, 2, 1, 3)
    v = (xv @ params["wv"]).reshape(B, L, heads, d_v).transpose(0, 2, 1, 3)
    attn = jnp.einsum("bhid,bhjd->bhij", q, k) * d_k ** -0.5
    attn = jax.nn.softmax(attn, axis=-1)
    res = jnp.einsum("bhij,bhjd->bhid", attn, v).transpose(0, 2, 1, 3).reshape(B, L, heads * d_v)
    res = res @ params["wo"] + params["bo"]
    return res.reshape(B, C, L)


if __name__ == "__main__":
    B, C, L = 2, 32, 16
    heads, d_k, d_v = 4, 8, 8          # fc_o requires heads*d_k == heads*d_v
    key = jax.random.PRNGKey(0)
    kx, kp = jax.random.split(key)
    x = jax.random.normal(kx, (B, C, L), jnp.float32)
    params = init_params(kp, C, heads, d_k, d_v)

    out = smhsa_forward(x, params, heads=heads, d_k=d_k, d_v=d_v, stride=1)
    out = jax.block_until_ready(out)

    ref = smhsa_reference(x, params, heads=heads, d_k=d_k, d_v=d_v)
    # Tolerance accounts for bf16 MXU operands + approx reciprocal (f32 reference).
    np.testing.assert_allclose(np.asarray(out), np.asarray(ref), rtol=2e-2, atol=2e-2)
    assert out.shape == (B, C, L)
    print("KERNEL_OK")
</pallas_src>

<mosaic_0001>
module attributes {stable_mosaic.version = 11 : i64} {
  func.func @_dwconv_relu_stats_kernel(%arg0: i32, %arg1: memref<1x16x32xf32, #tpu.memory_space<vmem>>, %arg2: memref<3x32xf32, #tpu.memory_space<vmem>>, %arg3: memref<3x32xf32, #tpu.memory_space<vmem>>, %arg4: memref<1x16x32xbf16, #tpu.memory_space<vmem>>, %arg5: memref<1x16x32xbf16, #tpu.memory_space<vmem>>, %arg6: memref<1x4x32xf32, #tpu.memory_space<vmem>>) attributes {dimension_semantics = [#tpu.dimension_semantics<parallel>], iteration_bounds = array<i64: 2>, scalar_prefetch = 0 : i64, scratch_operands = 0 : i64, tpu.core_type = #tpu.core_type<tc>, window_params = [{transform_indices = @transform_0, window_bounds = array<i64: 1, 16, 32>}, {pipeline_mode = #tpu.pipeline_mode<synchronous>, transform_indices = @transform_1, window_bounds = array<i64: 3, 32>}, {pipeline_mode = #tpu.pipeline_mode<synchronous>, transform_indices = @transform_2, window_bounds = array<i64: 3, 32>}, {transform_indices = @transform_3, window_bounds = array<i64: 1, 16, 32>}, {transform_indices = @transform_4, window_bounds = array<i64: 1, 16, 32>}, {transform_indices = @transform_5, window_bounds = array<i64: 1, 4, 32>}]} {
    %c0 = arith.constant 0 : index
    %c0_0 = arith.constant 0 : index
    %c0_1 = arith.constant 0 : index
    %0 = vector.load %arg1[%c0, %c0_0, %c0_1] : memref<1x16x32xf32, #tpu.memory_space<vmem>>, vector<1x16x32xf32>
    %1 = vector.shape_cast %0 : vector<1x16x32xf32> to vector<16x32xf32>
    %cst = arith.constant 0.000000e+00 : f32
    %2 = vector.broadcast %cst : f32 to vector<1x32xf32>
    %3 = vector.extract_strided_slice %1 {offsets = [0, 0], sizes = [15, 32], strides = [1, 1]} : vector<16x32xf32> to vector<15x32xf32>
    %4 = tpu.concatenate %2, %3 in 0 : vector<1x32xf32>, vector<15x32xf32> -> vector<16x32xf32>
    %5 = vector.extract_strided_slice %1 {offsets = [1, 0], sizes = [15, 32], strides = [1, 1]} : vector<16x32xf32> to vector<15x32xf32>
    %6 = tpu.concatenate %5, %2 in 0 : vector<15x32xf32>, vector<1x32xf32> -> vector<16x32xf32>
    %c0_2 = arith.constant 0 : index
    %c0_3 = arith.constant 0 : index
    %7 = vector.load %arg2[%c0_2, %c0_3] : memref<3x32xf32, #tpu.memory_space<vmem>>, vector<3x32xf32>
    %c0_4 = arith.constant 0 : index
    %c0_5 = arith.constant 0 : index
    %8 = vector.load %arg3[%c0_4, %c0_5] : memref<3x32xf32, #tpu.memory_space<vmem>>, vector<3x32xf32>
    %9 = vector.extract_strided_slice %7 {offsets = [0, 0], sizes = [1, 32], strides = [1, 1]} : vector<3x32xf32> to vector<1x32xf32>
    %10 = vector.broadcast %9 : vector<1x32xf32> to vector<16x32xf32>
    %11 = arith.mulf %10, %4 : vector<16x32xf32>
    %12 = vector.extract_strided_slice %7 {offsets = [1, 0], sizes = [1, 32], strides = [1, 1]} : vector<3x32xf32> to vector<1x32xf32>
    %13 = vector.broadcast %12 : vector<1x32xf32> to vector<16x32xf32>
    %14 = arith.mulf %13, %1 : vector<16x32xf32>
    %15 = arith.addf %11, %14 : vector<16x32xf32>
    %16 = vector.extract_strided_slice %7 {offsets = [2, 0], sizes = [1, 32], strides = [1, 1]} : vector<3x32xf32> to vector<1x32xf32>
    %17 = vector.broadcast %16 : vector<1x32xf32> to vector<16x32xf32>
    %18 = arith.mulf %17, %6 : vector<16x32xf32>
    %19 = arith.addf %15, %18 : vector<16x32xf32>
    %cst_6 = arith.constant 0.000000e+00 : f32
    %20 = vector.broadcast %cst_6 : f32 to vector<16x32xf32>
    %21 = arith.maximumf %19, %20 : vector<16x32xf32>
    %22 = vector.extract_strided_slice %8 {offsets = [0, 0], sizes = [1, 32], strides = [1, 1]} : vector<3x32xf32> to vector<1x32xf32>
    %23 = vector.broadcast %22 : vector<1x32xf32> to vector<16x32xf32>
    %24 = arith.mulf %23, %4 : vector<16x32xf32>
    %25 = vector.extract_strided_slice %8 {offsets = [1, 0], sizes = [1, 32], strides = [1, 1]} : vector<3x32xf32> to vector<1x32xf32>
    %26 = vector.broadcast %25 : vector<1x32xf32> to vector<16x32xf32>
    %27 = arith.mulf %26, %1 : vector<16x32xf32>
    %28 = arith.addf %24, %27 : vector<16x32xf32>
    %29 = vector.extract_strided_slice %8 {offsets = [2, 0], sizes = [1, 32], strides = [1, 1]} : vector<3x32xf32> to vector<1x32xf32>
    %30 = vector.broadcast %29 : vector<1x32xf32> to vector<16x32xf32>
    %31 = arith.mulf %30, %6 : vector<16x32xf32>
    %32 = arith.addf %28, %31 : vector<16x32xf32>
    %cst_7 = arith.constant 0.000000e+00 : f32
    %33 = vector.broadcast %cst_7 : f32 to vector<16x32xf32>
    %34 = arith.maximumf %32, %33 : vector<16x32xf32>
    %35 = arith.truncf %21 : vector<16x32xf32> to vector<16x32xbf16>
    %c0_8 = arith.constant 0 : index
    %c0_9 = arith.constant 0 : index
    %c0_10 = arith.constant 0 : index
    %36 = vector.load %arg4[%c0_8, %c0_9, %c0_10] : memref<1x16x32xbf16, #tpu.memory_space<vmem>>, vector<1x16x32xbf16>
    %37 = vector.shape_cast %36 : vector<1x16x32xbf16> to vector<16x32xbf16>
    %38 = vector.shape_cast %35 : vector<16x32xbf16> to vector<1x16x32xbf16>
    tpu.vector_store %arg4[%c0_8, %c0_9, %c0_10], %38 {strides = array<i32>} : memref<1x16x32xbf16, #tpu.memory_space<vmem>>, vector<1x16x32xbf16>,
    %39 = arith.truncf %34 : vector<16x32xf32> to vector<16x32xbf16>
    %c0_11 = arith.constant 0 : index
    %c0_12 = arith.constant 0 : index
    %c0_13 = arith.constant 0 : index
    %40 = vector.load %arg5[%c0_11, %c0_12, %c0_13] : memref<1x16x32xbf16, #tpu.memory_space<vmem>>, vector<1x16x32xbf16>
    %41 = vector.shape_cast %40 : vector<1x16x32xbf16> to vector<16x32xbf16>
    %42 = vector.shape_cast %39 : vector<16x32xbf16> to vector<1x16x32xbf16>
    tpu.vector_store %arg5[%c0_11, %c0_12, %c0_13], %42 {strides = array<i32>} : memref<1x16x32xbf16, #tpu.memory_space<vmem>>, vector<1x16x32xbf16>,
    %cst_14 = arith.constant dense<0.000000e+00> : vector<32xf32>
    %43 = vector.multi_reduction <add>, %21, %cst_14 [0] : vector<16x32xf32> to vector<32xf32>
    %44 = vector.shape_cast %43 : vector<32xf32> to vector<1x32xf32>
    %45 = arith.mulf %21, %21 : vector<16x32xf32>
    %cst_15 = arith.constant dense<0.000000e+00> : vector<32xf32>
    %46 = vector.multi_reduction <add>, %45, %cst_15 [0] : vector<16x32xf32> to vector<32xf32>
    %47 = vector.shape_cast %46 : vector<32xf32> to vector<1x32xf32>
    %cst_16 = arith.constant dense<0.000000e+00> : vector<32xf32>
    %48 = vector.multi_reduction <add>, %34, %cst_16 [0] : vector<16x32xf32> to vector<32xf32>
    %49 = vector.shape_cast %48 : vector<32xf32> to vector<1x32xf32>
    %50 = arith.mulf %34, %34 : vector<16x32xf32>
    %cst_17 = arith.constant dense<0.000000e+00> : vector<32xf32>
    %51 = vector.multi_reduction <add>, %50, %cst_17 [0] : vector<16x32xf32> to vector<32xf32>
    %52 = vector.shape_cast %51 : vector<32xf32> to vector<1x32xf32>
    %53 = tpu.concatenate %44, %47, %49, %52 in 0 : vector<1x32xf32>, vector<1x32xf32>, vector<1x32xf32>, vector<1x32xf32> -> vector<4x32xf32>
    %c0_18 = arith.constant 0 : index
    %c0_19 = arith.constant 0 : index
    %c0_20 = arith.constant 0 : index
    %54 = vector.load %arg6[%c0_18, %c0_19, %c0_20] : memref<1x4x32xf32, #tpu.memory_space<vmem>>, vector<1x4x32xf32>
    %55 = vector.shape_cast %54 : vector<1x4x32xf32> to vector<4x32xf32>
    %56 = vector.shape_cast %53 : vector<4x32xf32> to vector<1x4x32xf32>
    tpu.vector_store %arg6[%c0_18, %c0_19, %c0_20], %56 {strides = array<i32>} : memref<1x4x32xf32, #tpu.memory_space<vmem>>, vector<1x4x32xf32>,
    return
  }
  func.func @transform_0(%arg0: i32) -> (i32, i32, i32) {
    %c0_i32 = arith.constant 0 : i32
    %c0_i32_0 = arith.constant 0 : i32
    %c0_i32_1 = arith.constant 0 : i32
    return %arg0, %c0_i32, %c0_i32_0 : i32, i32, i32
  }
  func.func @transform_1(%arg0: i32) -> (i32, i32) {
    %c0_i32 = arith.constant 0 : i32
    %c0_i32_0 = arith.constant 0 : i32
    %c0_i32_1 = arith.constant 0 : i32
    return %c0_i32, %c0_i32_0 : i32, i32
  }
  func.func @transform_2(%arg0: i32) -> (i32, i32) {
    %c0_i32 = arith.constant 0 : i32
    %c0_i32_0 = arith.constant 0 : i32
    %c0_i32_1 = arith.constant 0 : i32
    return %c0_i32, %c0_i32_0 : i32, i32
  }
  func.func @transform_3(%arg0: i32) -> (i32, i32, i32) {
    %c0_i32 = arith.constant 0 : i32
    %c0_i32_0 = arith.constant 0 : i32
    %c0_i32_1 = arith.constant 0 : i32
    return %arg0, %c0_i32, %c0_i32_0 : i32, i32, i32
  }
  func.func @transform_4(%arg0: i32) -> (i32, i32, i32) {
    %c0_i32 = arith.constant 0 : i32
    %c0_i32_0 = arith.constant 0 : i32
    %c0_i32_1 = arith.constant 0 : i32
    return %arg0, %c0_i32, %c0_i32_0 : i32, i32, i32
  }
  func.func @transform_5(%arg0: i32) -> (i32, i32, i32) {
    %c0_i32 = arith.constant 0 : i32
    %c0_i32_0 = arith.constant 0 : i32
    %c0_i32_1 = arith.constant 0 : i32
    return %arg0, %c0_i32, %c0_i32_0 : i32, i32, i32
  }
}

</mosaic_0001>

<bundles_post_ra>
// kernel: tpu_custom_call.1
= control target key start
LH: loop header
LB: loop body
LE: loop exit
PB: predicated region body
PF: predicated region fallthrough
CT: control target
= control target key end

     0   :  { %s1212_s0 = inlined_call_operand.hbm [shape: f32[2,16,32], index: 0, kind: input, shape index: {}]   ;;  %s1213_s1 = inlined_call_operand.hbm [shape: f32[3,32], index: 1, kind: input, shape index: {}]   ;;  %s1214_s2 = inlined_call_operand.hbm [shape: f32[3,32], index: 2, kind: input, shape index: {}]   ;;  %s1215_s3 = inlined_call_operand.hbm [shape: bf16[2,16,32], index: 3, kind: output, shape index: {0}]   ;;  %s1216_s4 = inlined_call_operand.hbm [shape: bf16[2,16,32], index: 4, kind: output, shape index: {1}]   ;;  %s1217_s5 = inlined_call_operand.hbm [shape: f32[2,4,32], index: 5, kind: output, shape index: {2}]  }
   0x1   :  { %1219 = sst [smem:[#allocation16_spill]] %s1213_s1 }
   0x2   :  { %1220 = sst [smem:[#allocation17_spill]] %s1214_s2 }
   0x3   :  { %11 = vsyncpa [#allocation3], 0 }
   0x4   :  { %13 = vsyncpa [#allocation3 + $0x1], 0 }
   0x5   :  { %14 = vsyncpa [#allocation6], 0 }
   0x6   :  { %15 = vsyncpa [#allocation4], 0 }
   0x7   :  { %17 = vsyncpa [#allocation4 + $0x1], 0 }
   0x8   :  { %18 = vsyncpa [#allocation10], 0 }
   0x9   :  { %20 = vsyncpa [#allocation10 + $0x1], 0  ;;  %s977_s18 = smov 0   ;;  %s979_s19 = smov 0  }
   0xa   :  { %s981_s20 = smov 0   ;;  %s983_s21 = smov 0  }
   0xb LB: > { %s998_s22 = sadd.s32 4294967295, %s939_s21   ;;  %s1218_s23 = sadd.s32 4294967294, %s939_s21   ;;  %s939_s21 = sphi %s983_s21, %s1234_s21   ;;  %s935_s20 = sphi %s981_s20, %s1233_s20   ;;  %s931_s19 = sphi %s979_s19, %s1232_s19   ;;  %s927_s18 = sphi %s977_s18, %s1231_s18  }
   0xc   : > { %s1002_s24 = sadd.s32 1, %s939_s21   ;;  %s33_s25 = sadd.s32 1, %s935_s20 }
   0xd   : > { %s30_s26 = ssub.s32 %s939_s21, %s1002_s24  ;;  %p40_p0 = scmp.ne.s32.totalorder %s935_s20, %s931_s19 }
   0xe   : > { %p31_p1 = scmp.eq.s32.totalorder %s30_s26, 0  ;;  %p41_p2 = scmp.eq.s32.totalorder %s939_s21, 0 }
   0xf   : > { %p46_p3 = scmp.ne.s32.totalorder %s931_s19, %s927_s18  ;;  %p47_p4 = scmp.eq.s32.totalorder %s998_s22, 0 }
  0x10   : > { %s1014_s27 = scalar_select %p31_p1, %s935_s20, %s33_s25  }
  0x11   : > { %p1016_p5 = por %p41_p2, %p40_p0  ;;  %p1022_p6 = por %p47_p4, %p46_p3 }
  0x12   : > { %p112_p7 = scmp.eq.s32.totalorder %s998_s22, 1  ;;  %p118_p8 = scmp.eq.s32.totalorder %s1218_s23, 1 }
  0x13   : > { %p611_p9 = scmp.ge.s32.totalorder %s939_s21, 1  ;;  %p177_p10 = scmp.lt.s32.totalorder %s939_s21, 3 }
  0x14   : > { %p1031_p11 = por %p112_p7, %p40_p0  ;;  %p1035_p12 = por %p118_p8, %p46_p3 }
  0x15   : > { %p1039_p13 = pnand %p611_p9, %p177_p10  ;;  %s1226_s1 = sld [smem:[#allocation16_spill]] }
  0x16   : > { %s941_s11 = smov [#allocation5]   ;;  %p677_p3 = scmp.lt.s32.totalorder %s939_s21, 2 }
  0x17   : > { %p654_p1 = pneg %p1039_p13  ;;  %s191_s12 = sshll.u32 %s941_s11, 4  ;;  %s192_s12 = int_to_ptr.vmem [resolvable:$true] %s191_s12 }
  0x18   : > { %s1227_s2 = sld [smem:[#allocation17_spill]]  ;;  %p1057_p7 = pnand %p677_p3, %p1016_p5 }
  0x19   : > { %p655_p2 = pnand %p654_p1, %p47_p4  ;;  %s942_s17 = smov [#allocation7]  }
  0x1a   : > { %s203_s25 = sshll.u32 %s942_s17, 4  ;;  %s214_s26 = sand.u32 1, %s935_s20   ;;  %s204_s25 = int_to_ptr.vmem [resolvable:$true] %s203_s25 }
  0x1b   : > { %s189_s10 = sshll.u32 %s1226_s1, 4  ;;  %s615_s8 = sshll.u32 %s214_s26, 4  ;;  %s190_s10 = int_to_ptr.hbm [resolvable:$true] %s189_s10 }
  0x1c   : > { %657 = dma.hbm_to_vmem [thread:$0]  (!%p655_p2), %s190_s10, 64, %s192_s12, [#allocation6]  }
  0x1d   : > { %s635_s9 = sshll.u32 %s939_s21, 4  ;;  %s218_s14 = scalar_lea.vmem [#allocation2], %s615_s8 }
  0x1e   : > { %s201_s15 = sshll.u32 %s1227_s2, 4  ;;  %s223_s13 = scalar_lea.hbm %s1212_s0, %s635_s9  ;;  %s202_s15 = int_to_ptr.hbm [resolvable:$true] %s201_s15 }
  0x1f   : > { %660 = dma.hbm_to_vmem [thread:$0]  (!%p655_p2), %s202_s15, 64, %s204_s25, [#allocation6]  }
  0x20   : > { %s226_s1 = sshll.u32 %s218_s14, 4  ;;  %s224_s10 = sshll.u32 %s223_s13, 4  ;;  %s227_s1 = int_to_ptr.vmem [resolvable:$true] %s226_s1  ;;  %s225_s10 = int_to_ptr.hbm [resolvable:$true] %s224_s10 }
  0x21   : > { %s215_s28 = scalar_lea.sflag [#allocation3], %s214_s26  ;;  %s779_s12 = sshra.s32 %s225_s10, 4  ;;  %s780_s12 = int_to_ptr.hbm [resolvable:$true] %s779_s12 }
  0x22   : > { %s781_s2 = scalar_lea.hbm %s780_s12, 16  ;;  %p783_p8 = pneg %p1057_p7 }
  0x23   : > { %p782_p5 = scmp.ne.s32.totalorder %s780_s12, %s781_s2  ;;  %s786_s25 = scalar_lea.hbm %s1212_s0, 32 }
  0x24   : > { %p787_p1 = scmp.lt.s32.totalorder %s780_s12, %s1212_s0  ;;  %p788_p2 = scmp.lt.s32.totalorder %s786_s25, %s781_s2 }
  0x25   : > { %p784_p9 = pnand %p783_p8, %p782_p5 }
  0x26   : > { %p789_p3 = por %p788_p2, %p787_p1 }
  0x27   : > { %p785_p10 = pneg %p784_p9 }
  0x29   : > { %p790_p0 = pnand %p789_p3, %p785_p10 }
  0x2b   : > { %793 = shalt.err (!%p790_p0)
}
  0x2c   : > { %s943_s26 = smov 128   ;;  %s944_s8 = smov 8  }
  0x2d   : > { %664 = dma.hbm_to_vmem [thread:$0]  (!%p1057_p7), %s225_s10, 256, %s227_s1, %s215_s28, %s943_s26, %s943_s26, %s944_s8  }
  0x2e   : > { %238 = sbr.rel (%p1039_p13) target bundleno = 106 (0x6a), region = 32  ;;  %s1079_s11 = sand.u32 (!%p1039_p13), 1, %s931_s19  }
  0x2f   : > { %s619_s13 = sshll.u32 (!%p1039_p13), %s1079_s11, 4  ;;  %s241_s14 = scalar_lea.sflag (!%p1039_p13), [#allocation3], %s1079_s11 }
  0x30   : > { %s244_s2 = scalar_lea.vmem (!%p1039_p13), [#allocation2], %s619_s13 }
  0x33   : > { %910 = dma.done.wait (%p1022_p6), %s241_s14, 256  }
  0x34   : > { %912 = vsyncadd (%p1022_p6), %s241_s14, 4294967040 }
  0x35   : > { %914 = dma.done.wait (%p47_p4), [#allocation6], 128  }
  0x36   : > { %916 = vsyncadd (%p47_p4), [#allocation6], 4294967168  ;;  %v292_v0 = vld [vmem:[%s244_s2] sm:$0xff]  ;;  %v293_v1 = vld [vmem:[%s244_s2 + $0x8] sm:$0xff]  ;;  %vm296_vm0 = vcmask 1040384   ;;  %vm303_vm1 = vcmask 1046528  }
  0x37   : > { %v311_v2 = vld [vmem:[#allocation7] sm:$0x7]  ;;  %v297_v3 = vrot.slane %v292_v0, 7  ;;  %v304_v4 = vrot.slane %v292_v0, 1  ;;  %v305_v5 = vrot.slane %v293_v1, 1  ;;  %v298_v10 = vrot.slane %v293_v1, 7 }
  0x38   : > { %v327_v6 = vperm.slane %v311_v2, 0  ;;  %v310_v7 = vld [vmem:[#allocation5] sm:$0x7]  ;;  %v330_v8 = vperm.slane %v311_v2, 1  ;;  %v335_v9 = vperm.slane %v311_v2, 2  ;;  %s622_s1 = sshll.u32 %s1079_s11, 3 }
  0x39   : > { %v312_v11 = vperm.slane %v310_v7, 0  ;;  %v302_v12 = vsel %vm296_vm0, 0.0, %v297_v3  ;;  %v306_v13 = vsel %vm303_vm1, %v304_v4, %v305_v5  ;;  %v309_v14 = vsel %vm303_vm1, %v305_v5, 0.0  ;;  %s636_s29 = sshll.u32 %s998_s22, 3  ;;  %s1097_s7 = scalar_lea.vmem [#allocation9], %s622_s1 }
  0x3a   : > { %v315_v15 = vperm.slane %v310_v7, 1  ;;  %v328_v16 = vmul.f32 %v327_v6, %v302_v12  ;;  %v331_v17 = vmul.f32 %v330_v8, %v292_v0  ;;  %v336_v18 = vmul.f32 %v335_v9, %v306_v13  ;;  %s438_s16 = sshll.u32 %s1097_s7, 4  ;;  %s1103_s12 = scalar_lea.hbm %s1216_s4, %s636_s29  ;;  %s1117_s16 = int_to_ptr.vmem [resolvable:$true] %s438_s16 }
  0x3b   : > { %v299_v19 = vsel %vm296_vm0, %v297_v3, %v298_v10  ;;  %v332_v21 = vmul.f32 %v330_v8, %v293_v1  ;;  %v337_v22 = vmul.f32 %v335_v9, %v309_v14  ;;  %v313_v23 = vmul.f32 %v312_v11, %v302_v12  ;;  %s1107_s15 = scalar_lea.vmem [#allocation8], %s622_s1  ;;  %s1113_s9 = scalar_lea.hbm %s1215_s3, %s636_s29 }
  0x3c   : > { %v329_v20 = vmul.f32 %v327_v6, %v299_v19  ;;  %v333_v24 = vadd.f32 %v331_v17, %v328_v16  ;;  %v316_v25 = vmul.f32 %v315_v15, %v292_v0  ;;  %v320_v26 = vperm.slane %v310_v7, 2  ;;  %s421_s17 = sshll.u32 %s1107_s15, 4  ;;  %s403_s26 = sand.u32 1, %s998_s22   ;;  %s1121_s17 = int_to_ptr.vmem [resolvable:$true] %s421_s17 }
  0x3d   : > { %v314_v27 = vmul.f32 %v312_v11, %v299_v19  ;;  %v317_v29 = vmul.f32 %v315_v15, %v293_v1  ;;  %vm351_vm2 = vcmask 261120   ;;  %vm344_vm3 = vcmask 257024   ;;  %s440_s8 = sshll.u32 %s1103_s12, 4  ;;  %s423_s13 = sshll.u32 %s1113_s9, 4  ;;  %s1131_s8 = int_to_ptr.hbm [resolvable:$true] %s440_s8  ;;  %s1137_s13 = int_to_ptr.hbm [resolvable:$true] %s423_s13 }
  0x3e   : > { %v334_v28 = vadd.f32 %v332_v21, %v329_v20  ;;  %v338_v30 = vadd.f32 %v336_v18, %v333_v24  ;;  %v318_v31 = vadd.f32 %v316_v25, %v313_v23  ;;  %v321_v32 = vmul.f32 %v320_v26, %v306_v13  ;;  %s1144_s14 = scalar_lea.sflag [#allocation10], %s403_s26  ;;  %s823_s2 = sshra.s32 %s1131_s8, 4  ;;  %s824_s2 = int_to_ptr.hbm [resolvable:$true] %s823_s2 }
  0x3f   : > { %v322_v33 = vmul.f32 %v320_v26, %v309_v14  ;;  %v319_v35 = vadd.f32 %v317_v29, %v314_v27  ;;  %s825_s1 = scalar_lea.hbm %s824_s2, 8  ;;  %s829_s10 = scalar_lea.hbm %s1216_s4, 16 }
  0x40   : > { %v339_v34 = vadd.f32 %v337_v22, %v334_v28  ;;  %v340_v36 = vmax.f32 %v338_v30, 0.0  ;;  %v323_v37 = vadd.f32 %v321_v32, %v318_v31  ;;  %p826_p4 = scmp.ne.s32.totalorder %s824_s2, %s825_s1  ;;  %p830_p0 = scmp.lt.s32.totalorder %s824_s2, %s1216_s4 }
  0x41   : > { %v324_v39 = vadd.f32 %v322_v33, %v319_v35  ;;  %p831_p7 = scmp.lt.s32.totalorder %s829_s10, %s825_s1 }
  0x42   : > { %v341_v38 = vmax.f32 %v339_v34, 0.0  ;;  %v347_v40 = vpack.c.bf16 %v340_v36, %v340_v36  ;;  %v372_v41 = vsel %vm351_vm2, %v340_v36, 0.0  ;;  %v381_v42 = vmul.f32 %v340_v36, %v340_v36  ;;  %p827_p6 = pnand %p826_p4, %p1031_p11 }
  0x43   : > { %v325_v43 = vmax.f32 %v323_v37, 0.0  ;;  %v326_v47 = vmax.f32 %v324_v39, 0.0  ;;  %p832_p5 = por %p831_p7, %p830_p0 }
  0x44   : > { %v348_v44 = vpack.c.bf16 %v341_v38, %v341_v38  ;;  %v373_v45 = vsel %vm351_vm2, %v341_v38, 0.0  ;;  %v382_v46 = vmul.f32 %v341_v38, %v341_v38  ;;  %349 = vst.msk [vmem:[%s1097_s7] sm:$0xf] %vm344_vm3, %v347_v40  ;;  %v383_v55 = vsel %vm351_vm2, %v381_v42, 0.0  ;;  %p828_p13 = pneg %p827_p6 }
  0x45   : > { %v342_v48 = vpack.c.bf16 %v325_v43, %v325_v43  ;;  %v352_v49 = vsel %vm351_vm2, %v325_v43, 0.0  ;;  %v361_v50 = vmul.f32 %v325_v43, %v325_v43  ;;  %v374_v51 = vadd.f32 %v373_v45, %v372_v41 }
  0x46   : > { %350 = vst.msk [vmem:[%s1097_s7 + $0x4] sm:$0xf] %vm344_vm3, %v348_v44  ;;  %v343_v52 = vpack.c.bf16 %v326_v47, %v326_v47  ;;  %v353_v53 = vsel %vm351_vm2, %v326_v47, 0.0  ;;  %v362_v54 = vmul.f32 %v326_v47, %v326_v47  ;;  %v384_v59 = vsel %vm351_vm2, %v382_v46, 0.0  ;;  %p833_p8 = pnand %p832_p5, %p828_p13 }
  0x47   : > { %345 = vst.msk [vmem:[%s1107_s15] sm:$0xf] %vm344_vm3, %v342_v48  ;;  %v363_v56 = vsel %vm351_vm2, %v361_v50, 0.0  ;;  %v354_v57 = vadd.f32 %v353_v53, %v352_v49  ;;  %v375_v58 = vrot.slane %v374_v51, 4  ;;  %v385_v61 = vadd.f32 %v384_v59, %v383_v55 }
  0x48   : > { %346 = vst.msk [vmem:[%s1107_s15 + $0x4] sm:$0xf] %vm344_vm3, %v343_v52  ;;  %v364_v60 = vsel %vm351_vm2, %v362_v54, 0.0 }
  0x49   : > { %v355_v62 = vrot.slane %v354_v57, 4  ;;  %v365_v63 = vadd.f32 %v364_v60, %v363_v56  ;;  %v376_v0 = vadd.f32 %v375_v58, %v374_v51 }
  0x4a   : > { %836 = shalt.err (!%p833_p8)
}
  0x4b   : > { %s945_s15 = smov 64   ;;  %s946_s25 = smov 4   ;;  %v386_v1 = vrot.slane %v385_v61, 4 }
  0x4c   : > { %649 = dma.vmem_to_hbm [thread:$0]  (%p1031_p11), %s1117_s16, 128, %s1131_s8, %s1144_s14, %s945_s15, %s945_s15, %s946_s25  }
  0x4d   : > { %s399_s23 = scalar_lea.sflag [#allocation4], %s1079_s11  ;;  %s851_s9 = sshra.s32 %s1137_s13, 4  ;;  %s852_s9 = int_to_ptr.hbm [resolvable:$true] %s851_s9 }
  0x4e   : > { %s853_s26 = scalar_lea.hbm %s852_s9, 8  ;;  %s857_s29 = scalar_lea.hbm %s1215_s3, 16 }
  0x4f   : > { %p854_p9 = scmp.ne.s32.totalorder %s852_s9, %s853_s26  ;;  %p858_p2 = scmp.lt.s32.totalorder %s852_s9, %s1215_s3 }
  0x50   : > { %p859_p3 = scmp.lt.s32.totalorder %s857_s29, %s853_s26 }
  0x51   : > { %p855_p10 = pnand %p854_p9, %p1031_p11 }
  0x52   : > { %p860_p4 = por %p859_p3, %p858_p2 }
  0x53   : > { %p856_p1 = pneg %p855_p10 }
  0x55   : > { %p861_p6 = pnand %p860_p4, %p856_p1 }
  0x57   : > { %864 = shalt.err (!%p861_p6)
}
  0x58   : > { %648 = dma.vmem_to_hbm [thread:$0]  (%p1031_p11), %s1121_s17, 128, %s1137_s13, %s399_s23, %s945_s15, %s945_s15, %s946_s25   ;;  %v356_v2 = vadd.f32 %v355_v62, %v354_v57  ;;  %v366_v3 = vrot.slane %v365_v63, 4  ;;  %v377_v4 = vrot.slane %v376_v0, 2  ;;  %v387_v5 = vadd.f32 %v386_v1, %v385_v61 }
  0x59   : > { %s624_s16 = sshll.u32 %s1079_s11, 2  ;;  %s632_s8 = sshll.u32 %s998_s22, 2  ;;  %vm393_vm4 = vcmask 1041408   ;;  %vm395_vm5 = vcmask 1042432  }
  0x5a   : > { %v357_v6 = vrot.slane %v356_v2, 2  ;;  %v367_v7 = vadd.f32 %v366_v3, %v365_v63  ;;  %v378_v8 = vadd.f32 %v377_v4, %v376_v0  ;;  %v388_v9 = vrot.slane %v387_v5, 2  ;;  %s453_s17 = scalar_lea.hbm %s1217_s5, %s632_s8  ;;  %s291_s11 = scalar_lea.vmem [#allocation11], %s624_s16 }
  0x5b   : > { %s455_s13 = sshll.u32 %s291_s11, 4  ;;  %s457_s15 = sshll.u32 %s453_s17, 4  ;;  %s456_s13 = int_to_ptr.vmem [resolvable:$true] %s455_s13  ;;  %s458_s15 = int_to_ptr.hbm [resolvable:$true] %s457_s15 }
  0x5c   : > { %v358_v10 = vadd.f32 %v357_v6, %v356_v2  ;;  %v368_v11 = vrot.slane %v367_v7, 2  ;;  %v379_v12 = vrot.slane %v378_v8, 1  ;;  %v389_v13 = vadd.f32 %v388_v9, %v387_v5  ;;  %s879_s22 = sshra.s32 %s458_s15, 4  ;;  %s885_s26 = scalar_lea.hbm %s1217_s5, 8  ;;  %s880_s22 = int_to_ptr.hbm [resolvable:$true] %s879_s22 }
  0x5d   : > { %s881_s25 = scalar_lea.hbm %s880_s22, 4  ;;  %p886_p5 = scmp.lt.s32.totalorder %s880_s22, %s1217_s5 }
  0x5e   : > { %v359_v14 = vrot.slane %v358_v10, 1  ;;  %v369_v15 = vadd.f32 %v368_v11, %v367_v7  ;;  %v390_v16 = vrot.slane %v389_v13, 1  ;;  %v380_v19 = vadd.f32 %v379_v12, %v378_v8  ;;  %p882_p13 = scmp.ne.s32.totalorder %s880_s22, %s881_s25  ;;  %p887_p8 = scmp.lt.s32.totalorder %s885_s26, %s881_s25 }
  0x60   : > { %v360_v17 = vadd.f32 %v359_v14, %v358_v10  ;;  %v370_v18 = vrot.slane %v369_v15, 1  ;;  %v391_v21 = vadd.f32 %v390_v16, %v389_v13  ;;  %p883_p0 = pnand %p882_p13, %p1031_p11  ;;  %p888_p9 = por %p887_p8, %p886_p5 }
  0x62   : > { %v371_v20 = vadd.f32 %v370_v18, %v369_v15  ;;  %p884_p7 = pneg %p883_p0 }
  0x64   : > { %v392_v22 = vsel %vm296_vm0, %v360_v17, %v371_v20  ;;  %p889_p10 = pnand %p888_p9, %p884_p7 }
  0x65   : > { %v394_v23 = vsel %vm393_vm4, %v392_v22, %v380_v19 }
  0x66   : > { %v396_v24 = vsel %vm395_vm5, %v394_v23, %v391_v21 }
  0x67   : > { %397 = vst.msk [vmem:[%s291_s11] sm:$0xf] %vm344_vm3, %v396_v24 }
  0x68   : > { %892 = shalt.err (!%p889_p10)
}
  0x69   : > { %650 = dma.vmem_to_hbm [thread:$0]  (%p1031_p11), %s456_s13, 64, %s458_s15, %s1144_s14  }
  0x6a PF: > { %s469_s29 = sand.u32 1, %s927_s18   ;;  %p1229_p1 = scmp.ge.s32.totalorder %s939_s21, 2 }
  0x6b   : > { %s470_s7 = scalar_lea.sflag [#allocation4], %s469_s29 }
  0x6c   : > { %p666_p2 = pnand %p1229_p1, %p1035_p12 }
  0x6e   : > { %p667_p3 = pneg %p666_p2 }
  0x70   : > { %918 = dma.done.wait (%p667_p3), %s470_s7, 128  }
  0x71   : > { %920 = vsyncadd (%p667_p3), %s470_s7, 4294967168  ;;  %s1230_s10 = sadd.s32 4294967294, %s939_s21  }
  0x72   : > { %s479_s16 = sand.u32 1, %s1230_s10  }
  0x73   : > { %s480_s8 = scalar_lea.sflag [#allocation10], %s479_s16 }
  0x74   : > { %922 = dma.done.wait (%p667_p3), %s480_s8, 192  }
  0x75   : > { %924 = vsyncadd (%p667_p3), %s480_s8, 4294967104  ;;  %p23_p11 = scmp.ge.s32.totalorder %s1002_s24, 4   ;;  %s1231_s18 = smov %s931_s19 }
  0x76   : > { %s1232_s19 = smov %s935_s20  ;;  %s1233_s20 = smov %s1014_s27 }
  0x77   : > { %s1234_s21 = smov %s1002_s24  ;;  %25 = sbr.rel (!%p23_p11) target bundleno = 11 (0xb), region = 117 }
  0x7c   :  { %496 = vsyncpa [#allocation3], 1 }
  0x7d   :  { %498 = vsyncpa [#allocation3 + $0x1], 1 }
  0x7e   :  { %499 = vsyncpa [#allocation6], 1 }
  0x7f   :  { %500 = vsyncpa [#allocation4], 1 }
  0x80   :  { %502 = vsyncpa [#allocation4 + $0x1], 1 }
  0x81   :  { %503 = vsyncpa [#allocation10], 1 }
  0x82   :  { %505 = vsyncpa [#allocation10 + $0x1], 1 }

</bundles_post_ra>
